<compile_context>
chip_gen: v7x
topology: tpu7x:2x2x1
jax: 0.10.0
libtpu: 0.0.40
codegen_flags: <defaults>
</compile_context>

<pallas_src>
import functools

import jax
import jax.numpy as jnp
from jax.experimental import pallas as pl
from jax.experimental.pallas import tpu as pltpu


_VMEM_LIMIT_BYTES = 48 * 1024 * 1024


# ----------------------------------------------------------------------------
# Pallas kernels
# ----------------------------------------------------------------------------
def _se_pool_gate_kernel(x_ref, w1t_ref, w2t_ref, gate_ref, acc_ref,
                         *, inv_hw, n_chunks):
    """Spatial-sum accumulation + fused FC->ReLU->FC->sigmoid epilogue.

    x_ref   : (1, C, thw)   current spatial tile (spatial on the lane axis)
    w1t_ref : (Cr, C)       fc1 weight, transposed (column-form matmul)
    w2t_ref : (C, Cr)       fc2 weight, transposed
    gate_ref: (1, C, 1)     per-(n, c) gate, written only in the epilogue
    acc_ref : (C, 128)      lane-dense f32 accumulator (VMEM scratch)
    """
    t = pl.program_id(1)

    @pl.when(t == 0)
    def _():
        acc_ref[...] = jnp.zeros_like(acc_ref)

    # Steady state: lane-dense VPU adds only; keep the live set to one chunk.
    partial = x_ref[0, :, 0:128].astype(jnp.float32)
    for i in range(1, n_chunks):
        partial = partial + x_ref[0, :, i * 128:(i + 1) * 128].astype(jnp.float32)
    acc_ref[...] += partial

    @pl.when(t == pl.num_programs(1) - 1)
    def _():
        # Single cross-lane (XLU) reduce in the epilogue; true-HW mean.
        pooled = jnp.sum(acc_ref[...], axis=1, keepdims=True) * inv_hw     # (C, 1)
        h = jnp.maximum(
            jnp.dot(w1t_ref[...], pooled, preferred_element_type=jnp.float32),
            0.0)                                                           # (Cr, 1)
        z = jnp.dot(w2t_ref[...], h, preferred_element_type=jnp.float32)   # (C, 1)
        # numerically stable sigmoid: 0.5 * (tanh(z/2) + 1)   (EUP tanh)
        gate_ref[...] = (0.5 * (jnp.tanh(0.5 * z) + 1.0))[None, :, :]      # (1, C, 1)


def _se_scale_kernel(x_ref, gate_ref, o_ref):
    """o = x * gate; gate (1, C, 1) broadcasts along the lane (spatial) axis."""
    o_ref[...] = (x_ref[...] * gate_ref[...]).astype(o_ref.dtype)


# ----------------------------------------------------------------------------
# Tiling plan
# ----------------------------------------------------------------------------
def _plan_spatial(hw, c, itemsize, vmem_budget=24 * 1024 * 1024, max_tile=4096):
    """Return (hw_padded, tile) with tile a multiple of 128 dividing hw_padded.

    The lane cap is derived from a VMEM budget so the scale pass's
    double-buffered input+output blocks (~4 * C * tile * itemsize bytes) fit
    comfortably even on v7x's 64 MiB VMEM.
    """
    cap = (vmem_budget // (4 * c * itemsize)) // 128 * 128
    cap = max(128, min(cap, max_tile))
    hw128 = ((hw + 127) // 128) * 128
    if hw128 <= cap:
        return hw128, hw128                      # single lane-dense tile
    # Prefer a large multiple-of-128 divisor of hw128 (no extra padding).
    for t in range(cap, cap // 2 - 1, -128):
        if hw128 % t == 0:
            return hw128, t
    # Otherwise pad HW up to a multiple of the cap (zeros are harmless).
    hw_pad = ((hw + cap - 1) // cap) * cap
    return hw_pad, cap


# ----------------------------------------------------------------------------
# Wrapper
# ----------------------------------------------------------------------------
def se_block_forward(x, w1, w2):
    """SEBlock forward.  x: (N, C, H, W);  w1: (C, C//r);  w2: (C//r, C)."""
    n, c, h, w = x.shape
    hw = h * w
    itemsize = jnp.dtype(x.dtype).itemsize
    hw_pad, thw = _plan_spatial(hw, c, itemsize)
    n_t = hw_pad // thw
    n_chunks = thw // 128
    cr = w1.shape[1]

    xr = x.reshape(n, c, hw)
    if hw_pad != hw:
        # Lane-dense padding: zeros do not affect the sum; sliced off at the end.
        xr = jnp.pad(xr, ((0, 0), (0, 0), (0, hw_pad - hw)))

    w1t = w1.astype(jnp.float32).T      # (Cr, C)
    w2t = w2.astype(jnp.float32).T      # (C, Cr)

    # ---- pass 1: pooled mean + fused gate (FC -> ReLU -> FC -> sigmoid) ----
    gate = pl.pallas_call(
        functools.partial(_se_pool_gate_kernel, inv_hw=1.0 / hw,
                          n_chunks=n_chunks),
        out_shape=jax.ShapeDtypeStruct((n, c, 1), jnp.float32),
        grid=(n, n_t),
        in_specs=[
            pl.BlockSpec((1, c, thw), lambda i, t: (i, 0, t)),
            pl.BlockSpec((cr, c), lambda i, t: (0, 0)),
            pl.BlockSpec((c, cr), lambda i, t: (0, 0)),
        ],
        out_specs=pl.BlockSpec((1, c, 1), lambda i, t: (i, 0, 0)),
        scratch_shapes=[pltpu.VMEM((c, 128), jnp.float32)],
        compiler_params=pltpu.CompilerParams(
            dimension_semantics=("parallel", "arbitrary"),
            vmem_limit_bytes=_VMEM_LIMIT_BYTES),
    )(xr, w1t, w2t)

    # Multiply in x's dtype (bf16 stays bf16 on v6e/v7x); f32 path unchanged.
    gate_s = gate if x.dtype == jnp.float32 else gate.astype(x.dtype)

    # ---- pass 2: channel-wise rescale, fully parallel grid ----
    y = pl.pallas_call(
        _se_scale_kernel,
        out_shape=jax.ShapeDtypeStruct((n, c, hw_pad), x.dtype),
        grid=(n, n_t),
        in_specs=[
            pl.BlockSpec((1, c, thw), lambda i, t: (i, 0, t)),
            pl.BlockSpec((1, c, 1), lambda i, t: (i, 0, 0)),
        ],
        out_specs=pl.BlockSpec((1, c, thw), lambda i, t: (i, 0, t)),
        compiler_params=pltpu.CompilerParams(
            dimension_semantics=("parallel", "parallel"),
            vmem_limit_bytes=_VMEM_LIMIT_BYTES),
    )(xr, gate_s)

    if hw_pad != hw:
        y = y[:, :, :hw]
    return y.reshape(n, c, h, w)


# ----------------------------------------------------------------------------
# Pure-JAX reference (mirrors the PyTorch SEBlock)
# ----------------------------------------------------------------------------
def _se_reference(x, w1, w2):
    pooled = jnp.mean(x.astype(jnp.float32), axis=(2, 3))             # (N, C)
    hid = jnp.maximum(pooled @ w1, 0.0)
    gate = jax.nn.sigmoid(hid @ w2)                                   # (N, C)
    return (x.astype(jnp.float32) * gate[:, :, None, None]).astype(x.dtype)


# ----------------------------------------------------------------------------
if __name__ == "__main__":
    key = jax.random.PRNGKey(0)
    kx, k1, k2 = jax.random.split(key, 3)

    N, C, H, W = 2, 32, 16, 16          # small, SEBlock-shaped test
    reduction = 4
    Cr = C // reduction

    x = jax.random.normal(kx, (N, C, H, W), jnp.float32)
    # Linear(C, C//r, bias=False) / Linear(C//r, C, bias=False), stored transposed.
    w1 = jax.random.normal(k1, (C, Cr), jnp.float32) / jnp.sqrt(float(C))
    w2 = jax.random.normal(k2, (Cr, C), jnp.float32) / jnp.sqrt(float(Cr))

    fwd = jax.jit(se_block_forward)
    out = jax.block_until_ready(fwd(x, w1, w2))

    ref = _se_reference(x, w1, w2)
    assert out.shape == (N, C, H, W), out.shape
    assert bool(jnp.all(jnp.isfinite(out)))
    assert bool(jnp.allclose(out, ref, atol=2e-5, rtol=2e-5)), float(
        jnp.max(jnp.abs(out - ref)))
    print("KERNEL_OK")
</pallas_src>

<mosaic_0001>
module attributes {stable_mosaic.version = 11 : i64} {
  func.func @_se_scale_kernel(%arg0: i32, %arg1: i32, %arg2: memref<1x32x256xf32, #tpu.memory_space<vmem>>, %arg3: memref<1x32x1xf32, #tpu.memory_space<vmem>>, %arg4: memref<1x32x256xf32, #tpu.memory_space<vmem>>) attributes {dimension_semantics = [#tpu.dimension_semantics<parallel>, #tpu.dimension_semantics<parallel>], iteration_bounds = array<i64: 2, 1>, scalar_prefetch = 0 : i64, scratch_operands = 0 : i64, tpu.core_type = #tpu.core_type<tc>, window_params = [{transform_indices = @transform_0, window_bounds = array<i64: 1, 32, 256>}, {transform_indices = @transform_1, window_bounds = array<i64: 1, 32, 1>}, {transform_indices = @transform_2, window_bounds = array<i64: 1, 32, 256>}]} {
    %c0 = arith.constant 0 : index
    %c0_0 = arith.constant 0 : index
    %c0_1 = arith.constant 0 : index
    %0 = vector.load %arg2[%c0, %c0_0, %c0_1] : memref<1x32x256xf32, #tpu.memory_space<vmem>>, vector<1x32x256xf32>
    %c0_2 = arith.constant 0 : index
    %c0_3 = arith.constant 0 : index
    %c0_4 = arith.constant 0 : index
    %1 = vector.load %arg3[%c0_2, %c0_3, %c0_4] : memref<1x32x1xf32, #tpu.memory_space<vmem>>, vector<1x32x1xf32>
    %2 = vector.broadcast %1 : vector<1x32x1xf32> to vector<1x32x256xf32>
    %3 = arith.mulf %0, %2 : vector<1x32x256xf32>
    %c0_5 = arith.constant 0 : index
    %c0_6 = arith.constant 0 : index
    %c0_7 = arith.constant 0 : index
    %4 = vector.load %arg4[%c0_5, %c0_6, %c0_7] : memref<1x32x256xf32, #tpu.memory_space<vmem>>, vector<1x32x256xf32>
    tpu.vector_store %arg4[%c0_5, %c0_6, %c0_7], %3 {strides = array<i32>} : memref<1x32x256xf32, #tpu.memory_space<vmem>>, vector<1x32x256xf32>,
    return
  }
  func.func @transform_0(%arg0: i32, %arg1: i32) -> (i32, i32, i32) {
    %c0_i32 = arith.constant 0 : i32
    %c0_i32_0 = arith.constant 0 : i32
    return %arg0, %c0_i32, %arg1 : i32, i32, i32
  }
  func.func @transform_1(%arg0: i32, %arg1: i32) -> (i32, i32, i32) {
    %c0_i32 = arith.constant 0 : i32
    %c0_i32_0 = arith.constant 0 : i32
    %c0_i32_1 = arith.constant 0 : i32
    return %arg0, %c0_i32, %c0_i32_0 : i32, i32, i32
  }
  func.func @transform_2(%arg0: i32, %arg1: i32) -> (i32, i32, i32) {
    %c0_i32 = arith.constant 0 : i32
    %c0_i32_0 = arith.constant 0 : i32
    return %arg0, %c0_i32, %arg1 : i32, i32, i32
  }
}

module attributes {stable_mosaic.version = 11 : i64} {
  func.func @_se_pool_gate_kernel(%arg0: i32, %arg1: i32, %arg2: memref<1x32x256xf32, #tpu.memory_space<vmem>>, %arg3: memref<8x32xf32, #tpu.memory_space<vmem>>, %arg4: memref<32x8xf32, #tpu.memory_space<vmem>>, %arg5: memref<1x32x1xf32, #tpu.memory_space<vmem>>, %arg6: memref<32x128xf32, #tpu.memory_space<vmem>>) attributes {dimension_semantics = [#tpu.dimension_semantics<parallel>, #tpu.dimension_semantics<arbitrary>], iteration_bounds = array<i64: 2, 1>, scalar_prefetch = 0 : i64, scratch_operands = 1 : i64, tpu.core_type = #tpu.core_type<tc>, window_params = [{transform_indices = @transform_0, window_bounds = array<i64: 1, 32, 256>}, {pipeline_mode = #tpu.pipeline_mode<synchronous>, transform_indices = @transform_1, window_bounds = array<i64: 8, 32>}, {pipeline_mode = #tpu.pipeline_mode<synchronous>, transform_indices = @transform_2, window_bounds = array<i64: 32, 8>}, {transform_indices = @transform_3, window_bounds = array<i64: 1, 32, 1>}]} {
    %c0_i32 = arith.constant 0 : i32
    %0 = arith.cmpi eq, %arg1, %c0_i32 : i32
    %1 = arith.extui %0 : i1 to i32
    %c0_i32_0 = arith.constant 0 : i32
    %2 = arith.cmpi ne, %1, %c0_i32_0 : i32
    scf.if %2 {
      %cst = arith.constant 0.000000e+00 : f32
      %14 = vector.broadcast %cst : f32 to vector<32x128xf32>
      %c0_11 = arith.constant 0 : index
      %c0_12 = arith.constant 0 : index
      %15 = vector.load %arg6[%c0_11, %c0_12] : memref<32x128xf32, #tpu.memory_space<vmem>>, vector<32x128xf32>
      tpu.vector_store %arg6[%c0_11, %c0_12], %14 {strides = array<i32>} : memref<32x128xf32, #tpu.memory_space<vmem>>, vector<32x128xf32>,
    } else {
    }
    %c0 = arith.constant 0 : index
    %c0_1 = arith.constant 0 : index
    %c0_2 = arith.constant 0 : index
    %3 = vector.load %arg2[%c0, %c0_1, %c0_2] : memref<1x32x256xf32, #tpu.memory_space<vmem>>, vector<1x32x128xf32>
    %4 = vector.shape_cast %3 : vector<1x32x128xf32> to vector<32x128xf32>
    %c0_3 = arith.constant 0 : index
    %c0_4 = arith.constant 0 : index
    %c128 = arith.constant 128 : index
    %5 = vector.load %arg2[%c0_3, %c0_4, %c128] : memref<1x32x256xf32, #tpu.memory_space<vmem>>, vector<1x32x128xf32>
    %6 = vector.shape_cast %5 : vector<1x32x128xf32> to vector<32x128xf32>
    %7 = arith.addf %4, %6 : vector<32x128xf32>
    %c0_5 = arith.constant 0 : index
    %c0_6 = arith.constant 0 : index
    %8 = vector.load %arg6[%c0_5, %c0_6] : memref<32x128xf32, #tpu.memory_space<vmem>>, vector<32x128xf32>
    %9 = arith.addf %8, %7 : vector<32x128xf32>
    %c0_7 = arith.constant 0 : index
    %c0_8 = arith.constant 0 : index
    %10 = vector.load %arg6[%c0_7, %c0_8] : memref<32x128xf32, #tpu.memory_space<vmem>>, vector<32x128xf32>
    tpu.vector_store %arg6[%c0_7, %c0_8], %9 {strides = array<i32>} : memref<32x128xf32, #tpu.memory_space<vmem>>, vector<32x128xf32>,
    %c0_i32_9 = arith.constant 0 : i32
    %11 = arith.cmpi eq, %arg1, %c0_i32_9 : i32
    %12 = arith.extui %11 : i1 to i32
    %c0_i32_10 = arith.constant 0 : i32
    %13 = arith.cmpi ne, %12, %c0_i32_10 : i32
    scf.if %13 {
      %c0_11 = arith.constant 0 : index
      %c0_12 = arith.constant 0 : index
      %14 = vector.load %arg6[%c0_11, %c0_12] : memref<32x128xf32, #tpu.memory_space<vmem>>, vector<32x128xf32>
      %cst = arith.constant dense<0.000000e+00> : vector<32xf32>
      %15 = vector.multi_reduction <add>, %14, %cst [1] : vector<32x128xf32> to vector<32xf32>
      %16 = vector.shape_cast %15 : vector<32xf32> to vector<32x1xf32>
      %cst_13 = arith.constant 3.906250e-03 : f32
      %17 = vector.broadcast %cst_13 : f32 to vector<32x1xf32>
      %18 = arith.mulf %16, %17 : vector<32x1xf32>
      %c0_14 = arith.constant 0 : index
      %c0_15 = arith.constant 0 : index
      %19 = vector.load %arg3[%c0_14, %c0_15] : memref<8x32xf32, #tpu.memory_space<vmem>>, vector<8x32xf32>
      %cst_16 = arith.constant dense<0.000000e+00> : vector<8x1xf32>
      %20 = tpu.matmul %19, %18, %cst_16 {dimension_numbers = #tpu.dot_dimension_numbers<[1], [0], [0], [1], [0, 0, 1, 1], [], []>} : vector<8x32xf32>, vector<32x1xf32>, vector<8x1xf32> -> vector<8x1xf32>
      %cst_17 = arith.constant 0.000000e+00 : f32
      %21 = vector.broadcast %cst_17 : f32 to vector<8x1xf32>
      %22 = arith.maximumf %20, %21 : vector<8x1xf32>
      %c0_18 = arith.constant 0 : index
      %c0_19 = arith.constant 0 : index
      %23 = vector.load %arg4[%c0_18, %c0_19] : memref<32x8xf32, #tpu.memory_space<vmem>>, vector<32x8xf32>
      %cst_20 = arith.constant dense<0.000000e+00> : vector<32x1xf32>
      %24 = tpu.matmul %23, %22, %cst_20 {dimension_numbers = #tpu.dot_dimension_numbers<[1], [0], [0], [1], [0, 0, 1, 1], [], []>} : vector<32x8xf32>, vector<8x1xf32>, vector<32x1xf32> -> vector<32x1xf32>
      %cst_21 = arith.constant 5.000000e-01 : f32
      %25 = vector.broadcast %cst_21 : f32 to vector<32x1xf32>
      %26 = arith.mulf %25, %24 : vector<32x1xf32>
      %27 = math.tanh %26 : vector<32x1xf32>
      %cst_22 = arith.constant 1.000000e+00 : f32
      %28 = vector.broadcast %cst_22 : f32 to vector<32x1xf32>
      %29 = arith.addf %27, %28 : vector<32x1xf32>
      %cst_23 = arith.constant 5.000000e-01 : f32
      %30 = vector.broadcast %cst_23 : f32 to vector<32x1xf32>
      %31 = arith.mulf %30, %29 : vector<32x1xf32>
      %32 = vector.shape_cast %31 : vector<32x1xf32> to vector<1x32x1xf32>
      %c0_24 = arith.constant 0 : index
      %c0_25 = arith.constant 0 : index
      %c0_26 = arith.constant 0 : index
      %33 = vector.load %arg5[%c0_24, %c0_25, %c0_26] : memref<1x32x1xf32, #tpu.memory_space<vmem>>, vector<1x32x1xf32>
      tpu.vector_store %arg5[%c0_24, %c0_25, %c0_26], %32 {strides = array<i32>} : memref<1x32x1xf32, #tpu.memory_space<vmem>>, vector<1x32x1xf32>,
    } else {
    }
    return
  }
  func.func @transform_0(%arg0: i32, %arg1: i32) -> (i32, i32, i32) {
    %c0_i32 = arith.constant 0 : i32
    %c0_i32_0 = arith.constant 0 : i32
    return %arg0, %c0_i32, %arg1 : i32, i32, i32
  }
  func.func @transform_1(%arg0: i32, %arg1: i32) -> (i32, i32) {
    %c0_i32 = arith.constant 0 : i32
    %c0_i32_0 = arith.constant 0 : i32
    %c0_i32_1 = arith.constant 0 : i32
    return %c0_i32, %c0_i32_0 : i32, i32
  }
  func.func @transform_2(%arg0: i32, %arg1: i32) -> (i32, i32) {
    %c0_i32 = arith.constant 0 : i32
    %c0_i32_0 = arith.constant 0 : i32
    %c0_i32_1 = arith.constant 0 : i32
    return %c0_i32, %c0_i32_0 : i32, i32
  }
  func.func @transform_3(%arg0: i32, %arg1: i32) -> (i32, i32, i32) {
    %c0_i32 = arith.constant 0 : i32
    %c0_i32_0 = arith.constant 0 : i32
    %c0_i32_1 = arith.constant 0 : i32
    return %arg0, %c0_i32, %c0_i32_0 : i32, i32, i32
  }
}

</mosaic_0001>

<bundles_post_ra>
// kernel: se_block_forward.3
= control target key start
LH: loop header
LB: loop body
LE: loop exit
PB: predicated region body
PF: predicated region fallthrough
CT: control target
= control target key end

     0   :  { %s433_s9 = smov 0   ;;  %s435_s10 = smov 0   ;;  %s469_s0 = inlined_call_operand.vmem [shape: f32[2,32,256], index: 0, kind: input, shape index: {}]   ;;  %s470_s1 = inlined_call_operand.vmem [shape: f32[2,32,1], index: 1, kind: input, shape index: {}]   ;;  %s471_s2 = inlined_call_operand.vmem [shape: f32[2,32,256], index: 2, kind: output, shape index: {}]  }
   0x1   :  { %s437_s11 = smov 0  }
   0x2 LB: > { %s24_s12 = sadd.s32 1, %s411_s10  ;;  %p354_p0 = scmp.ge.s32.totalorder %s415_s11, 1  ;;  %s415_s11 = sphi %s437_s11, %s12_s11   ;;  %s411_s10 = sphi %s435_s10, %s473_s10   ;;  %s407_s9 = sphi %s433_s9, %s472_s9  }
   0x3   : > { %p26_p1 = scmp.ge.s32.totalorder %s24_s12, 2  ;;  %p143_p2 = scmp.lt.s32.totalorder %s415_s11, 3 }
   0x5   : > { %s475_s12 = smov (%p26_p1, %s24_s12), 0  ;;  %p144_p3 = pnand %p354_p0, %p143_p2 }
   0x6   : > { %p179_p4 = scmp.lt.s32.totalorder (!%p144_p3), %s407_s9, 1  ;;  %v417_v0 = vmov (!%p144_p3), 0  }
   0x7   : > { %147 = sbr.rel (%p144_p3) target bundleno = 154 (0x9a), region = 28  ;;  %392 = vset.pattern.permute.xlu1 (!%p144_p3), %v417_v0  ;;  %391 = vset.pattern.permute.xlu0 (!%p144_p3), %v417_v0 }
   0xe   : > { %s477_s9 = smov (!%p179_p4, %s407_s9), 1 }
   0xf   : > { %s364_s13 = sshll.u32 %s477_s9, 5  ;;  %s363_s17 = sshll.u32 %s477_s9, 6 }
  0x10   : > { %s192_s16 = scalar_lea.vmem %s470_s1, %s364_s13  ;;  %s186_s20 = scalar_lea.vmem %s469_s0, %s363_s17 }
  0x11   : > { %v213_v1 = vld [vmem:[%s192_s16 + $0x10] sm:$0xff]  ;;  %v211_v2 = vld [vmem:[%s192_s16] sm:$0xff]  ;;  %v214_v3 = vld [vmem:[%s192_s16 + $0x18] sm:$0xff]  ;;  %s201_s23 = scalar_lea.vmem %s471_s2, %s363_s17 }
  0x12   : > { %227 = vperm.xlu1 %392, %v213_v1   ;;  %217 = vperm.xlu0 %391, %v211_v2   ;;  %v212_v4 = vld [vmem:[%s192_s16 + $0x8] sm:$0xff]  ;;  %v207_v5 = vld [vmem:[%s186_s20 + $0x20] sm:$0xff]  ;;  %v209_v15 = vld [vmem:[%s186_s20 + $0x30] sm:$0xff] }
  0x13   : > { %v208_v6 = vld [vmem:[%s186_s20 + $0x28] sm:$0xff]  ;;  %v203_v7 = vld [vmem:[%s186_s20] sm:$0xff]  ;;  %v210_v16 = vld [vmem:[%s186_s20 + $0x38] sm:$0xff] }
  0x14   : > { %v204_v8 = vld [vmem:[%s186_s20 + $0x8] sm:$0xff]  ;;  %v205_v17 = vld [vmem:[%s186_s20 + $0x10] sm:$0xff]  ;;  %v206_v18 = vld [vmem:[%s186_s20 + $0x18] sm:$0xff] }
  0x16   : > { %232 = vperm.xlu1 %392, %v214_v3   ;;  %222 = vperm.xlu0 %391, %v212_v4  }
  0x91   : > { %v228_v9 = vpop.permute.xlu1 %227  ;;  %v218_v10 = vpop.permute.xlu0 %217 }
  0x92   : > { %v239_v11 = vmul.f32 %v228_v9, %v207_v5  ;;  %v240_v12 = vmul.f32 %v228_v9, %v208_v6  ;;  %v235_v13 = vmul.f32 %v218_v10, %v203_v7  ;;  %v236_v14 = vmul.f32 %v218_v10, %v204_v8 }
  0x94   : > { %247 = vst [vmem:[%s201_s23 + $0x20] sm:$0xff] %v239_v11  ;;  %248 = vst [vmem:[%s201_s23 + $0x28] sm:$0xff] %v240_v12 }
  0x95   : > { %243 = vst [vmem:[%s201_s23] sm:$0xff] %v235_v13  ;;  %244 = vst [vmem:[%s201_s23 + $0x8] sm:$0xff] %v236_v14  ;;  %v233_v19 = vpop.permute.xlu1 %232  ;;  %v223_v20 = vpop.permute.xlu0 %222 }
  0x96   : > { %v241_v21 = vmul.f32 %v233_v19, %v209_v15  ;;  %v242_v22 = vmul.f32 %v233_v19, %v210_v16  ;;  %v237_v23 = vmul.f32 %v223_v20, %v205_v17  ;;  %v238_v24 = vmul.f32 %v223_v20, %v206_v18 }
  0x98   : > { %249 = vst [vmem:[%s201_s23 + $0x30] sm:$0xff] %v241_v21  ;;  %250 = vst [vmem:[%s201_s23 + $0x38] sm:$0xff] %v242_v22 }
  0x99   : > { %245 = vst [vmem:[%s201_s23 + $0x10] sm:$0xff] %v237_v23  ;;  %246 = vst [vmem:[%s201_s23 + $0x18] sm:$0xff] %v238_v24 }
  0x9a PF: > { %s12_s11 = sadd.s32 1, %s415_s11   ;;  %s472_s9 = smov %s411_s10 }
  0x9b   : > { %p9_p5 = scmp.ge.s32.totalorder %s12_s11, 4   ;;  %s473_s10 = smov %s475_s12 }
  0x9d   :  { %11 = sbr.rel (!%p9_p5) target bundleno = 2 (0x2), region = 61 }

// kernel: se_block_forward.2
= control target key start
LH: loop header
LB: loop body
LE: loop exit
PB: predicated region body
PF: predicated region fallthrough
CT: control target
= control target key end

     0   :  { %s653_s12 = smov 0   ;;  %s655_s13 = smov 0   ;;  %s705_s0 = inlined_call_operand.vmem [shape: f32[2,32,256], index: 0, kind: input, shape index: {}]   ;;  %s706_s1 = inlined_call_operand.vmem [shape: f32[8,32], index: 1, kind: input, shape index: {}]   ;;  %s707_s2 = inlined_call_operand.vmem [shape: f32[32,8], index: 2, kind: input, shape index: {}]   ;;  %s708_s3 = inlined_call_operand.vmem [shape: f32[2,32,1], index: 3, kind: output, shape index: {}]  }
   0x1   :  { %s657_s14 = smov 0  }
   0x2 LB: > { %s25_s15 = sadd.s32 1, %s624_s13  ;;  %p522_p0 = scmp.ge.s32.totalorder %s628_s14, 1  ;;  %s628_s14 = sphi %s657_s14, %s13_s14   ;;  %s624_s13 = sphi %s655_s13, %s710_s13   ;;  %s620_s12 = sphi %s653_s12, %s709_s12  }
   0x3   : > { %p27_p1 = scmp.ge.s32.totalorder %s25_s15, 2  ;;  %p156_p2 = scmp.lt.s32.totalorder %s628_s14, 3 }
   0x5   : > { %s712_s15 = smov (%p27_p1, %s25_s15), 0  ;;  %p157_p3 = pnand %p522_p0, %p156_p2 }
   0x6   : > { %p185_p4 = scmp.lt.s32.totalorder (!%p157_p3), %s620_s12, 1  ;;  %v630_v12 = vmov (!%p157_p3), 0.0|0.0   ;;  %vm631_vm0 = vmmov (!%p157_p3), 0   ;;  %v632_v13 = vmov (!%p157_p3), 0.0   ;;  %v250_v24 = vld [vmem:[%s706_s1] sm:$0xff] (!%p157_p3)  ;;  %vm251_vm1 = vcmask (!%p157_p3), 261120  }
   0x7   : > { %160 = sbr.rel (%p157_p3) target bundleno = 629 (0x275), region = 32  ;;  %565 = vmatprep.subr.bf16.mxu0 (!%p157_p3), %v630_v12  ;;  %554 = vmatprep.mubr.msk.f32.mxu0 (!%p157_p3), %vm631_vm0, %v632_v13  ;;  %v326_v25 = vld [vmem:[%s707_s2] sm:$0xff] (!%p157_p3)  ;;  %vm330_vm2 = vcmask (!%p157_p3), 64512   ;;  %v327_v29 = vld [vmem:[%s707_s2 + $0x8] sm:$0xff] (!%p157_p3)  ;;  %v328_v30 = vld [vmem:[%s707_s2 + $0x10] sm:$0xff] (!%p157_p3)  ;;  %vm444_vm3 = vcmask (!%p157_p3), 7168  }
   0x8   : > { %559 = vmatprep.mubr.msk.f32.mxu1 (!%p157_p3), %vm330_vm2, %v326_v25  ;;  %v329_v31 = vld [vmem:[%s707_s2 + $0x18] sm:$0xff] (!%p157_p3) }
   0xe   : > { %s714_s12 = smov (!%p185_p4, %s620_s12), 1 }
   0xf   : > { %s534_s16 = sshll.u32 %s714_s12, 6  ;;  %s535_s30 = sshll.u32 %s714_s12, 5 }
  0x10   : > { %s192_s19 = scalar_lea.vmem %s705_s0, %s534_s16  ;;  %s198_s6 = scalar_lea.vmem %s708_s3, %s535_s30 }
  0x11   : > { %v209_v0 = vld [vmem:[%s192_s19 + $0x20] sm:$0xff]  ;;  %v213_v1 = vld [vmem:[%s192_s19 + $0x28] sm:$0xff]  ;;  %v210_v5 = vld [vmem:[%s192_s19 + $0x30] sm:$0xff] }
  0x12   : > { %v207_v2 = vld [vmem:[%s192_s19] sm:$0xff]  ;;  %v217_v3 = vadd.f32 %v213_v1, %v209_v0  ;;  %v211_v4 = vld [vmem:[%s192_s19 + $0x8] sm:$0xff]  ;;  %v214_v6 = vld [vmem:[%s192_s19 + $0x38] sm:$0xff] }
  0x13   : > { %v215_v7 = vadd.f32 %v211_v4, %v207_v2  ;;  %v208_v8 = vld [vmem:[%s192_s19 + $0x10] sm:$0xff]  ;;  %v212_v9 = vld [vmem:[%s192_s19 + $0x18] sm:$0xff]  ;;  %v218_v10 = vadd.f32 %v214_v6, %v210_v5 }
  0x14   : > { %242 = vadd.xlane.f32.xlu1 %v217_v3  ;;  %v216_v11 = vadd.f32 %v212_v9, %v208_v8 }
  0x15   : > { %238 = vadd.xlane.f32.xlu0 %v215_v7 }
  0x18   : > { %244 = vadd.xlane.f32.xlu1 %v218_v10 }
  0x19   : > { %240 = vadd.xlane.f32.xlu0 %v216_v11 }
  0xa1   : > { %v243_v14 = vpop.xlane.xlu1 %242 }
  0xa2   : > { %v239_v15 = vpop.xlane.xlu0 %238  ;;  %v248_v20 = vmul.f32 0.00390625, %v243_v14 }
  0xa3   : > { %v246_v18 = vmul.f32 0.00390625, %v239_v15 }
  0xa5   : > { %v245_v16 = vpop.xlane.xlu1 %244 }
  0xa6   : > { %v241_v17 = vpop.xlane.xlu0 %240  ;;  %v249_v21 = vmul.f32 0.00390625, %v245_v16 }
  0xa7   : > { %v247_v19 = vmul.f32 0.00390625, %v241_v17 }
  0xa8   : > { %v569_v23 = vpack.c.bf16 %v249_v21, %v248_v20 }
  0xa9   : > { %v566_v22 = vpack.c.bf16 %v247_v19, %v246_v18 }
  0xab   : > { %567 = vmatpush3.bf16.msra.mxu0 %v566_v22 }
  0xac   : > { %568 = vmatprep.subr.bf16.mxu0 %v630_v12 }
  0xaf   : > { %570 = vmatpush3.bf16.msra.mxu0 %v569_v23 }
  0xb2   : > { %555 = vmatmul.mubr.msk.f32.vlgmr.msra.gmra.mrb[0].mxu0 %vm251_vm1, %v250_v24 }
 0x185   : > { %v321_v26 = vpop.f32.mrb[0].mxu0 }
 0x186   : > { %v325_v27 = vmax.f32 %v321_v26, 0.0  ;;  %v556_v28 = vpop.f32.mrb[1].mxu0 }
 0x188   : > { %557 = vmatprep.subr.mxu1 %v325_v27 }
 0x189   : > { %558 = vmatpush3.msra.mxu1 %v325_v27 }
 0x18a   : > { %560 = vmatmul.mubr.msk.f32.vlgmr.msra.gmra.mrb[0].mxu1 %vm330_vm2, %v327_v29 }
 0x18b   : > { %562 = vmatprep.mubr.msk.f32.mxu1 %vm330_vm2, %v328_v30 }
 0x18e   : > { %563 = vmatmul.mubr.msk.f32.gmra.mrb[2].mxu1 %vm330_vm2, %v329_v31 }
 0x25d   : > { %v561_v32 = vpop.f32.mrb[0].mxu1 }
 0x25e   : > { %v429_v33 = vmul.f32 0.5, %v561_v32  ;;  %v409_v34 = vpop.f32.mrb[1].mxu1 }
 0x25f   : > { %v428_v35 = vmul.f32 0.5, %v409_v34 }
 0x260   : > { %598 = vtanh.f32 %v429_v33 }
 0x261   : > { %600 = vtanh.f32 %v428_v35  ;;  %v564_v36 = vpop.f32.mrb[2].mxu1 }
 0x262   : > { %v431_v37 = vmul.f32 0.5, %v564_v36  ;;  %v419_v38 = vpop.f32.mrb[3].mxu1 }
 0x263   : > { %v430_v39 = vmul.f32 0.5, %v419_v38 }
 0x264   : > { %602 = vtanh.f32 %v431_v37 }
 0x265   : > { %604 = vtanh.f32 %v430_v39 }
 0x26a   : > { %v599_v40 = vpop.eup %598 }
 0x26b   : > { %v601_v41 = vpop.eup %600  ;;  %v437_v42 = vadd.f32 1.0, %v599_v40 }
 0x26c   : > { %v436_v43 = vadd.f32 1.0, %v601_v41 }
 0x26d   : > { %v441_v44 = vmul.f32 0.5, %v437_v42 }
 0x26e   : > { %v603_v45 = vpop.eup %602  ;;  %v440_v46 = vmul.f32 0.5, %v436_v43 }
 0x26f   : > { %v605_v47 = vpop.eup %604  ;;  %446 = vst.msk [vmem:[%s198_s6 + $0x8] sm:$0xff] %vm444_vm3, %v441_v44  ;;  %v439_v48 = vadd.f32 1.0, %v603_v45 }
 0x270   : > { %445 = vst.msk [vmem:[%s198_s6] sm:$0xff] %vm444_vm3, %v440_v46  ;;  %v438_v49 = vadd.f32 1.0, %v605_v47 }
 0x271   : > { %v443_v50 = vmul.f32 0.5, %v439_v48 }
 0x272   : > { %v442_v51 = vmul.f32 0.5, %v438_v49 }
 0x273   : > { %448 = vst.msk [vmem:[%s198_s6 + $0x18] sm:$0xff] %vm444_vm3, %v443_v50 }
 0x274   : > { %447 = vst.msk [vmem:[%s198_s6 + $0x10] sm:$0xff] %vm444_vm3, %v442_v51 }
 0x275 PF: > { %s13_s14 = sadd.s32 1, %s628_s14   ;;  %s709_s12 = smov %s624_s13 }
 0x276   : > { %p10_p5 = scmp.ge.s32.totalorder %s13_s14, 4   ;;  %s710_s13 = smov %s712_s15 }
 0x278   :  { %12 = sbr.rel (!%p10_p5) target bundleno = 2 (0x2), region = 70 }

</bundles_post_ra>
